<compile_context>
chip_gen: v5e
topology: v5e:2x2
jax: 0.10.0
libtpu: 0.0.40
codegen_flags: <defaults>
</compile_context>

<pallas_src>
import jax
import jax.numpy as jnp
from jax import lax
from jax.experimental import pallas as pl
from jax.experimental.pallas import tpu as pltpu


def _make_encoder_kernel(n_shared_layers: int):
    """Build the fused-encoder kernel body (n_shared_layers is static)."""

    def kernel(x_ref,
               fw1_ref, fb1_ref, fw2_ref, fb2_ref, fw3_ref, fb3_ref,
               sw1_ref, sb1_ref, sw2_ref, sb2_ref, sw3_ref, sb3_ref,
               out_ref):

        def resblock(x, w1, b1, w2, b2, w3, b3):
            h = jnp.dot(x, w1, preferred_element_type=jnp.float32) + b1
            h = jnp.maximum(h, 0.0)
            main = jnp.dot(h, w2, preferred_element_type=jnp.float32) + b2
            skip = jnp.dot(x, w3, preferred_element_type=jnp.float32) + b3
            return main + skip          # dropout = identity (eval mode)

        x = x_ref[...]

        # Layer 1: d_flatten -> d_hidden
        h = resblock(x, fw1_ref[...], fb1_ref[...], fw2_ref[...],
                     fb2_ref[...], fw3_ref[...], fb3_ref[...])

        # Layers 2..n: the SAME shared ResBlock applied (n_layers - 1) times;
        # weights stay resident in VMEM, activation stays on-chip.
        if n_shared_layers > 0:
            sw1, sb1 = sw1_ref[...], sb1_ref[...]
            sw2, sb2 = sw2_ref[...], sb2_ref[...]
            sw3, sb3 = sw3_ref[...], sb3_ref[...]

            def body(_, hh):
                return resblock(hh, sw1, sb1, sw2, sb2, sw3, sb3)

            h = lax.fori_loop(0, n_shared_layers, body, h, unroll=True)

        out_ref[...] = h.astype(out_ref.dtype)

    return kernel


def tide_encoder_pallas(x, first_params, shared_params, n_layers, *, tile_b=8):
    """Full TideEncoder forward in a single fused pallas_call."""
    B, d_flatten = x.shape
    d_hidden = first_params[2].shape[1]          # W2: (res_hidden, d_hidden)
    n_shared = n_layers - 1

    # Pad batch to a multiple of tile_b (block shape must tile the padded batch).
    pad = (-B) % tile_b
    if pad:
        x = jnp.pad(x, ((0, pad), (0, 0)))
    Bp = B + pad
    grid = (Bp // tile_b,)

    all_params = tuple(first_params) + tuple(shared_params)

    # Weights/biases: full-array blocks with a constant index map -> loaded
    # into VMEM once and kept resident across the batch grid axis.
    def weight_spec(arr):
        nd = arr.ndim
        return pl.BlockSpec(arr.shape, lambda b, _nd=nd: (0,) * _nd)

    in_specs = [pl.BlockSpec((tile_b, d_flatten), lambda b: (b, 0))]
    in_specs += [weight_spec(p) for p in all_params]
    out_spec = pl.BlockSpec((tile_b, d_hidden), lambda b: (b, 0))

    # Advisory cost estimate for the XLA scheduler.
    fw1, _, fw2, _, fw3, _ = first_params
    sw1, _, sw2, _, sw3, _ = shared_params
    flops = 2 * Bp * (fw1.size + fw2.size + fw3.size)
    flops += 2 * Bp * n_shared * (sw1.size + sw2.size + sw3.size)
    bytes_accessed = (x.size + Bp * d_hidden
                      + sum(int(p.size) for p in all_params)) * 4
    cost = pl.CostEstimate(flops=int(flops), transcendentals=0,
                           bytes_accessed=int(bytes_accessed))

    out = pl.pallas_call(
        _make_encoder_kernel(n_shared),
        out_shape=jax.ShapeDtypeStruct((Bp, d_hidden), jnp.float32),
        grid_spec=pltpu.PrefetchScalarGridSpec(
            num_scalar_prefetch=0,
            grid=grid,
            in_specs=in_specs,
            out_specs=out_spec,
        ),
        compiler_params=pltpu.CompilerParams(
            dimension_semantics=("parallel",),
        ),
        cost_estimate=cost,
    )(x, *all_params)

    return out[:B] if pad else out


def init_resblock_params(key, d_in, d_hidden_res, d_out):
    """Deterministic synthetic init (Linear weights stored as (in, out))."""
    k1, k2, k3, k4, k5, k6 = jax.random.split(key, 6)
    s1 = 1.0 / jnp.sqrt(d_in)
    s2 = 1.0 / jnp.sqrt(d_hidden_res)
    w1 = jax.random.uniform(k1, (d_in, d_hidden_res), jnp.float32, -s1, s1)
    b1 = jax.random.uniform(k2, (1, d_hidden_res), jnp.float32, -s1, s1)
    w2 = jax.random.uniform(k3, (d_hidden_res, d_out), jnp.float32, -s2, s2)
    b2 = jax.random.uniform(k4, (1, d_out), jnp.float32, -s2, s2)
    w3 = jax.random.uniform(k5, (d_in, d_out), jnp.float32, -s1, s1)
    b3 = jax.random.uniform(k6, (1, d_out), jnp.float32, -s1, s1)
    return (w1, b1, w2, b2, w3, b3)


def tide_encoder_reference(x, first_params, shared_params, n_layers):
    """Pure-JAX reference for correctness checking."""
    def rb(x, p):
        w1, b1, w2, b2, w3, b3 = p
        h = jnp.maximum(x @ w1 + b1, 0.0)
        return (h @ w2 + b2) + (x @ w3 + b3)
    h = rb(x, first_params)
    for _ in range(n_layers - 1):
        h = rb(h, shared_params)
    return h


if __name__ == "__main__":
    # Small, TPU-friendly shapes (lane-dim multiples of 128).
    n_layers = 3
    d_flatten = 256          # flattened (steps x features x covariates)
    d_hidden = 128           # res_hidden == d_hidden in the module
    batch = 16
    tile_b = 8

    key = jax.random.PRNGKey(0)
    kx, kf, ks = jax.random.split(key, 3)

    X = jax.random.normal(kx, (batch, d_flatten), dtype=jnp.float32)
    first_params = init_resblock_params(kf, d_flatten, d_hidden, d_hidden)
    shared_params = init_resblock_params(ks, d_hidden, d_hidden, d_hidden)

    out = tide_encoder_pallas(X, first_params, shared_params, n_layers,
                              tile_b=tile_b)
    out = jax.block_until_ready(out)

    ref = tide_encoder_reference(X, first_params, shared_params, n_layers)
    assert out.shape == (batch, d_hidden), out.shape
    assert jnp.allclose(out, ref, atol=1e-4, rtol=1e-4), (
        float(jnp.max(jnp.abs(out - ref))))

    print("KERNEL_OK")
</pallas_src>

<mosaic_0001>
module attributes {stable_mosaic.version = 11 : i64} {
  func.func @kernel(%arg0: i32, %arg1: memref<8x256xf32, #tpu.memory_space<vmem>>, %arg2: memref<256x128xf32, #tpu.memory_space<vmem>>, %arg3: memref<1x128xf32, #tpu.memory_space<vmem>>, %arg4: memref<128x128xf32, #tpu.memory_space<vmem>>, %arg5: memref<1x128xf32, #tpu.memory_space<vmem>>, %arg6: memref<256x128xf32, #tpu.memory_space<vmem>>, %arg7: memref<1x128xf32, #tpu.memory_space<vmem>>, %arg8: memref<128x128xf32, #tpu.memory_space<vmem>>, %arg9: memref<1x128xf32, #tpu.memory_space<vmem>>, %arg10: memref<128x128xf32, #tpu.memory_space<vmem>>, %arg11: memref<1x128xf32, #tpu.memory_space<vmem>>, %arg12: memref<128x128xf32, #tpu.memory_space<vmem>>, %arg13: memref<1x128xf32, #tpu.memory_space<vmem>>, %arg14: memref<8x128xf32, #tpu.memory_space<vmem>>) attributes {dimension_semantics = [#tpu.dimension_semantics<parallel>], iteration_bounds = array<i64: 2>, scalar_prefetch = 0 : i64, scratch_operands = 0 : i64, tpu.core_type = #tpu.core_type<tc>, window_params = [{transform_indices = @transform_0, window_bounds = array<i64: 8, 256>}, {pipeline_mode = #tpu.pipeline_mode<synchronous>, transform_indices = @transform_1, window_bounds = array<i64: 256, 128>}, {pipeline_mode = #tpu.pipeline_mode<synchronous>, transform_indices = @transform_2, window_bounds = array<i64: 1, 128>}, {pipeline_mode = #tpu.pipeline_mode<synchronous>, transform_indices = @transform_3, window_bounds = array<i64: 128, 128>}, {pipeline_mode = #tpu.pipeline_mode<synchronous>, transform_indices = @transform_4, window_bounds = array<i64: 1, 128>}, {pipeline_mode = #tpu.pipeline_mode<synchronous>, transform_indices = @transform_5, window_bounds = array<i64: 256, 128>}, {pipeline_mode = #tpu.pipeline_mode<synchronous>, transform_indices = @transform_6, window_bounds = array<i64: 1, 128>}, {pipeline_mode = #tpu.pipeline_mode<synchronous>, transform_indices = @transform_7, window_bounds = array<i64: 128, 128>}, {pipeline_mode = #tpu.pipeline_mode<synchronous>, transform_indices = @transform_8, window_bounds = array<i64: 1, 128>}, {pipeline_mode = #tpu.pipeline_mode<synchronous>, transform_indices = @transform_9, window_bounds = array<i64: 128, 128>}, {pipeline_mode = #tpu.pipeline_mode<synchronous>, transform_indices = @transform_10, window_bounds = array<i64: 1, 128>}, {pipeline_mode = #tpu.pipeline_mode<synchronous>, transform_indices = @transform_11, window_bounds = array<i64: 128, 128>}, {pipeline_mode = #tpu.pipeline_mode<synchronous>, transform_indices = @transform_12, window_bounds = array<i64: 1, 128>}, {transform_indices = @transform_13, window_bounds = array<i64: 8, 128>}]} {
    %c0 = arith.constant 0 : index
    %c0_0 = arith.constant 0 : index
    %0 = vector.load %arg1[%c0, %c0_0] : memref<8x256xf32, #tpu.memory_space<vmem>>, vector<8x256xf32>
    %c0_1 = arith.constant 0 : index
    %c0_2 = arith.constant 0 : index
    %1 = vector.load %arg2[%c0_1, %c0_2] : memref<256x128xf32, #tpu.memory_space<vmem>>, vector<256x128xf32>
    %c0_3 = arith.constant 0 : index
    %c0_4 = arith.constant 0 : index
    %2 = vector.load %arg3[%c0_3, %c0_4] : memref<1x128xf32, #tpu.memory_space<vmem>>, vector<1x128xf32>
    %c0_5 = arith.constant 0 : index
    %c0_6 = arith.constant 0 : index
    %3 = vector.load %arg4[%c0_5, %c0_6] : memref<128x128xf32, #tpu.memory_space<vmem>>, vector<128x128xf32>
    %c0_7 = arith.constant 0 : index
    %c0_8 = arith.constant 0 : index
    %4 = vector.load %arg5[%c0_7, %c0_8] : memref<1x128xf32, #tpu.memory_space<vmem>>, vector<1x128xf32>
    %c0_9 = arith.constant 0 : index
    %c0_10 = arith.constant 0 : index
    %5 = vector.load %arg6[%c0_9, %c0_10] : memref<256x128xf32, #tpu.memory_space<vmem>>, vector<256x128xf32>
    %c0_11 = arith.constant 0 : index
    %c0_12 = arith.constant 0 : index
    %6 = vector.load %arg7[%c0_11, %c0_12] : memref<1x128xf32, #tpu.memory_space<vmem>>, vector<1x128xf32>
    %cst = arith.constant dense<0.000000e+00> : vector<8x128xf32>
    %7 = tpu.matmul %0, %1, %cst {dimension_numbers = #tpu.dot_dimension_numbers<[1], [0], [0], [1], [0, 0, 1, 1], [], []>} : vector<8x256xf32>, vector<256x128xf32>, vector<8x128xf32> -> vector<8x128xf32>
    %8 = vector.broadcast %2 : vector<1x128xf32> to vector<8x128xf32>
    %9 = arith.addf %7, %8 : vector<8x128xf32>
    %cst_13 = arith.constant 0.000000e+00 : f32
    %10 = vector.broadcast %cst_13 : f32 to vector<8x128xf32>
    %11 = arith.maximumf %9, %10 : vector<8x128xf32>
    %cst_14 = arith.constant dense<0.000000e+00> : vector<8x128xf32>
    %12 = tpu.matmul %11, %3, %cst_14 {dimension_numbers = #tpu.dot_dimension_numbers<[1], [0], [0], [1], [0, 0, 1, 1], [], []>} : vector<8x128xf32>, vector<128x128xf32>, vector<8x128xf32> -> vector<8x128xf32>
    %13 = vector.broadcast %4 : vector<1x128xf32> to vector<8x128xf32>
    %14 = arith.addf %12, %13 : vector<8x128xf32>
    %cst_15 = arith.constant dense<0.000000e+00> : vector<8x128xf32>
    %15 = tpu.matmul %0, %5, %cst_15 {dimension_numbers = #tpu.dot_dimension_numbers<[1], [0], [0], [1], [0, 0, 1, 1], [], []>} : vector<8x256xf32>, vector<256x128xf32>, vector<8x128xf32> -> vector<8x128xf32>
    %16 = vector.broadcast %6 : vector<1x128xf32> to vector<8x128xf32>
    %17 = arith.addf %15, %16 : vector<8x128xf32>
    %18 = arith.addf %14, %17 : vector<8x128xf32>
    %c0_16 = arith.constant 0 : index
    %c0_17 = arith.constant 0 : index
    %19 = vector.load %arg8[%c0_16, %c0_17] : memref<128x128xf32, #tpu.memory_space<vmem>>, vector<128x128xf32>
    %c0_18 = arith.constant 0 : index
    %c0_19 = arith.constant 0 : index
    %20 = vector.load %arg9[%c0_18, %c0_19] : memref<1x128xf32, #tpu.memory_space<vmem>>, vector<1x128xf32>
    %c0_20 = arith.constant 0 : index
    %c0_21 = arith.constant 0 : index
    %21 = vector.load %arg10[%c0_20, %c0_21] : memref<128x128xf32, #tpu.memory_space<vmem>>, vector<128x128xf32>
    %c0_22 = arith.constant 0 : index
    %c0_23 = arith.constant 0 : index
    %22 = vector.load %arg11[%c0_22, %c0_23] : memref<1x128xf32, #tpu.memory_space<vmem>>, vector<1x128xf32>
    %c0_24 = arith.constant 0 : index
    %c0_25 = arith.constant 0 : index
    %23 = vector.load %arg12[%c0_24, %c0_25] : memref<128x128xf32, #tpu.memory_space<vmem>>, vector<128x128xf32>
    %c0_26 = arith.constant 0 : index
    %c0_27 = arith.constant 0 : index
    %24 = vector.load %arg13[%c0_26, %c0_27] : memref<1x128xf32, #tpu.memory_space<vmem>>, vector<1x128xf32>
    %c0_i32 = arith.constant 0 : i32
    %cst_28 = arith.constant dense<0.000000e+00> : vector<8x128xf32>
    %25 = tpu.matmul %18, %19, %cst_28 {dimension_numbers = #tpu.dot_dimension_numbers<[1], [0], [0], [1], [0, 0, 1, 1], [], []>} : vector<8x128xf32>, vector<128x128xf32>, vector<8x128xf32> -> vector<8x128xf32>
    %26 = vector.broadcast %20 : vector<1x128xf32> to vector<8x128xf32>
    %27 = arith.addf %25, %26 : vector<8x128xf32>
    %cst_29 = arith.constant 0.000000e+00 : f32
    %28 = vector.broadcast %cst_29 : f32 to vector<8x128xf32>
    %29 = arith.maximumf %27, %28 : vector<8x128xf32>
    %cst_30 = arith.constant dense<0.000000e+00> : vector<8x128xf32>
    %30 = tpu.matmul %29, %21, %cst_30 {dimension_numbers = #tpu.dot_dimension_numbers<[1], [0], [0], [1], [0, 0, 1, 1], [], []>} : vector<8x128xf32>, vector<128x128xf32>, vector<8x128xf32> -> vector<8x128xf32>
    %31 = vector.broadcast %22 : vector<1x128xf32> to vector<8x128xf32>
    %32 = arith.addf %30, %31 : vector<8x128xf32>
    %cst_31 = arith.constant dense<0.000000e+00> : vector<8x128xf32>
    %33 = tpu.matmul %18, %23, %cst_31 {dimension_numbers = #tpu.dot_dimension_numbers<[1], [0], [0], [1], [0, 0, 1, 1], [], []>} : vector<8x128xf32>, vector<128x128xf32>, vector<8x128xf32> -> vector<8x128xf32>
    %34 = vector.broadcast %24 : vector<1x128xf32> to vector<8x128xf32>
    %35 = arith.addf %33, %34 : vector<8x128xf32>
    %36 = arith.addf %32, %35 : vector<8x128xf32>
    %c1_i32 = arith.constant 1 : i32
    %cst_32 = arith.constant dense<0.000000e+00> : vector<8x128xf32>
    %37 = tpu.matmul %36, %19, %cst_32 {dimension_numbers = #tpu.dot_dimension_numbers<[1], [0], [0], [1], [0, 0, 1, 1], [], []>} : vector<8x128xf32>, vector<128x128xf32>, vector<8x128xf32> -> vector<8x128xf32>
    %38 = vector.broadcast %20 : vector<1x128xf32> to vector<8x128xf32>
    %39 = arith.addf %37, %38 : vector<8x128xf32>
    %cst_33 = arith.constant 0.000000e+00 : f32
    %40 = vector.broadcast %cst_33 : f32 to vector<8x128xf32>
    %41 = arith.maximumf %39, %40 : vector<8x128xf32>
    %cst_34 = arith.constant dense<0.000000e+00> : vector<8x128xf32>
    %42 = tpu.matmul %41, %21, %cst_34 {dimension_numbers = #tpu.dot_dimension_numbers<[1], [0], [0], [1], [0, 0, 1, 1], [], []>} : vector<8x128xf32>, vector<128x128xf32>, vector<8x128xf32> -> vector<8x128xf32>
    %43 = vector.broadcast %22 : vector<1x128xf32> to vector<8x128xf32>
    %44 = arith.addf %42, %43 : vector<8x128xf32>
    %cst_35 = arith.constant dense<0.000000e+00> : vector<8x128xf32>
    %45 = tpu.matmul %36, %23, %cst_35 {dimension_numbers = #tpu.dot_dimension_numbers<[1], [0], [0], [1], [0, 0, 1, 1], [], []>} : vector<8x128xf32>, vector<128x128xf32>, vector<8x128xf32> -> vector<8x128xf32>
    %46 = vector.broadcast %24 : vector<1x128xf32> to vector<8x128xf32>
    %47 = arith.addf %45, %46 : vector<8x128xf32>
    %48 = arith.addf %44, %47 : vector<8x128xf32>
    %c0_36 = arith.constant 0 : index
    %c0_37 = arith.constant 0 : index
    %49 = vector.load %arg14[%c0_36, %c0_37] : memref<8x128xf32, #tpu.memory_space<vmem>>, vector<8x128xf32>
    tpu.vector_store %arg14[%c0_36, %c0_37], %48 {strides = array<i32>} : memref<8x128xf32, #tpu.memory_space<vmem>>, vector<8x128xf32>,
    return
  }
  func.func @transform_0(%arg0: i32) -> (i32, i32) {
    %c0_i32 = arith.constant 0 : i32
    %c0_i32_0 = arith.constant 0 : i32
    return %arg0, %c0_i32 : i32, i32
  }
  func.func @transform_1(%arg0: i32) -> (i32, i32) {
    %c0_i32 = arith.constant 0 : i32
    %c0_i32_0 = arith.constant 0 : i32
    %c0_i32_1 = arith.constant 0 : i32
    return %c0_i32, %c0_i32_0 : i32, i32
  }
  func.func @transform_2(%arg0: i32) -> (i32, i32) {
    %c0_i32 = arith.constant 0 : i32
    %c0_i32_0 = arith.constant 0 : i32
    %c0_i32_1 = arith.constant 0 : i32
    return %c0_i32, %c0_i32_0 : i32, i32
  }
  func.func @transform_3(%arg0: i32) -> (i32, i32) {
    %c0_i32 = arith.constant 0 : i32
    %c0_i32_0 = arith.constant 0 : i32
    %c0_i32_1 = arith.constant 0 : i32
    return %c0_i32, %c0_i32_0 : i32, i32
  }
  func.func @transform_4(%arg0: i32) -> (i32, i32) {
    %c0_i32 = arith.constant 0 : i32
    %c0_i32_0 = arith.constant 0 : i32
    %c0_i32_1 = arith.constant 0 : i32
    return %c0_i32, %c0_i32_0 : i32, i32
  }
  func.func @transform_5(%arg0: i32) -> (i32, i32) {
    %c0_i32 = arith.constant 0 : i32
    %c0_i32_0 = arith.constant 0 : i32
    %c0_i32_1 = arith.constant 0 : i32
    return %c0_i32, %c0_i32_0 : i32, i32
  }
  func.func @transform_6(%arg0: i32) -> (i32, i32) {
    %c0_i32 = arith.constant 0 : i32
    %c0_i32_0 = arith.constant 0 : i32
    %c0_i32_1 = arith.constant 0 : i32
    return %c0_i32, %c0_i32_0 : i32, i32
  }
  func.func @transform_7(%arg0: i32) -> (i32, i32) {
    %c0_i32 = arith.constant 0 : i32
    %c0_i32_0 = arith.constant 0 : i32
    %c0_i32_1 = arith.constant 0 : i32
    return %c0_i32, %c0_i32_0 : i32, i32
  }
  func.func @transform_8(%arg0: i32) -> (i32, i32) {
    %c0_i32 = arith.constant 0 : i32
    %c0_i32_0 = arith.constant 0 : i32
    %c0_i32_1 = arith.constant 0 : i32
    return %c0_i32, %c0_i32_0 : i32, i32
  }
  func.func @transform_9(%arg0: i32) -> (i32, i32) {
    %c0_i32 = arith.constant 0 : i32
    %c0_i32_0 = arith.constant 0 : i32
    %c0_i32_1 = arith.constant 0 : i32
    return %c0_i32, %c0_i32_0 : i32, i32
  }
  func.func @transform_10(%arg0: i32) -> (i32, i32) {
    %c0_i32 = arith.constant 0 : i32
    %c0_i32_0 = arith.constant 0 : i32
    %c0_i32_1 = arith.constant 0 : i32
    return %c0_i32, %c0_i32_0 : i32, i32
  }
  func.func @transform_11(%arg0: i32) -> (i32, i32) {
    %c0_i32 = arith.constant 0 : i32
    %c0_i32_0 = arith.constant 0 : i32
    %c0_i32_1 = arith.constant 0 : i32
    return %c0_i32, %c0_i32_0 : i32, i32
  }
  func.func @transform_12(%arg0: i32) -> (i32, i32) {
    %c0_i32 = arith.constant 0 : i32
    %c0_i32_0 = arith.constant 0 : i32
    %c0_i32_1 = arith.constant 0 : i32
    return %c0_i32, %c0_i32_0 : i32, i32
  }
  func.func @transform_13(%arg0: i32) -> (i32, i32) {
    %c0_i32 = arith.constant 0 : i32
    %c0_i32_0 = arith.constant 0 : i32
    return %arg0, %c0_i32 : i32, i32
  }
}

</mosaic_0001>

<bundles_post_ra>
// kernel: tpu_custom_call.1
= control target key start
LH: loop header
LB: loop body
LE: loop exit
PB: predicated region body
PF: predicated region fallthrough
CT: control target
= control target key end

     0   :  { %s1881_s0 = inlined_call_operand.hbm [shape: f32[16,256], index: 0, kind: input, shape index: {}]   ;;  %s1882_s1 = inlined_call_operand.hbm [shape: f32[256,128], index: 1, kind: input, shape index: {}]   ;;  %s1883_s2 = inlined_call_operand.vmem [shape: f32[1,128], index: 2, kind: input, shape index: {}]   ;;  %s1884_s3 = inlined_call_operand.hbm [shape: f32[128,128], index: 3, kind: input, shape index: {}]   ;;  %s1885_s4 = inlined_call_operand.vmem [shape: f32[1,128], index: 4, kind: input, shape index: {}]   ;;  %s1886_s5 = inlined_call_operand.hbm [shape: f32[256,128], index: 5, kind: input, shape index: {}]   ;;  %s1887_s6 = inlined_call_operand.vmem [shape: f32[1,128], index: 6, kind: input, shape index: {}]   ;;  %s1888_s7 = inlined_call_operand.hbm [shape: f32[128,128], index: 7, kind: input, shape index: {}]   ;;  %s1889_s8 = inlined_call_operand.vmem [shape: f32[1,128], index: 8, kind: input, shape index: {}]   ;;  %s1890_s9 = inlined_call_operand.hbm [shape: f32[128,128], index: 9, kind: input, shape index: {}]   ;;  %s1891_s10 = inlined_call_operand.vmem [shape: f32[1,128], index: 10, kind: input, shape index: {}]   ;;  %s1892_s11 = inlined_call_operand.hbm [shape: f32[128,128], index: 11, kind: input, shape index: {}]   ;;  %s1893_s12 = inlined_call_operand.vmem [shape: f32[1,128], index: 12, kind: input, shape index: {}]   ;;  %s1894_s13 = inlined_call_operand.hbm [shape: f32[16,128], index: 13, kind: output, shape index: {}]  }
   0x1   :  { %1896 = sst [smem:[#allocation21_spill]] %s1882_s1 }
   0x2   :  { %1897 = sst [smem:[#allocation22_spill]] %s1884_s3 }
   0x3   :  { %1898 = sst [smem:[#allocation23_spill]] %s1886_s5 }
   0x4   :  { %1899 = sst [smem:[#allocation24_spill]] %s1888_s7 }
   0x5   :  { %1900 = sst [smem:[#allocation25_spill]] %s1890_s9 }
   0x6   :  { %1901 = sst [smem:[#allocation26_spill]] %s1892_s11 }
   0x7   :  { %1902 = sst [smem:[#allocation27_spill]] %s1894_s13 }
   0x8   :  { %18 = vsyncpa [#allocation3], 0 }
   0x9   :  { %20 = vsyncpa [#allocation3 + $0x1], 0 }
   0xa   :  { %21 = vsyncpa [#allocation6], 0 }
   0xb   :  { %22 = vsyncpa [#allocation9], 0 }
   0xc   :  { %23 = vsyncpa [#allocation12], 0 }
   0xd   :  { %24 = vsyncpa [#allocation4], 0 }
   0xe   :  { %26 = vsyncpa [#allocation4 + $0x1], 0  ;;  %s1591_s25 = smov 0   ;;  %s1593_s26 = smov 0  }
   0xf   :  { %s1595_s27 = smov 0   ;;  %s1597_s28 = smov 0  }
  0x10 LB: > { %s1903_s1 = sld [smem:[#allocation21_spill]]  ;;  %s1615_s15 = sadd.s32 4294967295, %s1511_s28   ;;  %s1511_s28 = sphi %s1597_s28, %s1923_s28   ;;  %s1507_s27 = sphi %s1595_s27, %s1922_s27   ;;  %s1503_s26 = sphi %s1593_s26, %s1921_s26   ;;  %s1499_s25 = sphi %s1591_s25, %s1920_s25  }
  0x11   : > { %p1083_p0 = scmp.ge.s32.totalorder %s1511_s28, 1  ;;  %p53_p1 = scmp.eq.s32.totalorder %s1615_s15, 0 }
  0x12   : > { %p341_p2 = scmp.lt.s32.totalorder %s1511_s28, 3  ;;  %s1513_s17 = smov [#allocation5]  }
  0x13   : > { %s354_s18 = sshll.u32 %s1513_s17, 4  ;;  %s1905_s5 = sld [smem:[#allocation23_spill]]  ;;  %s355_s18 = int_to_ptr.vmem [resolvable:$true] %s354_s18 }
  0x14   : > { %p1620_p3 = pnand %p1083_p0, %p341_p2  ;;  %s1907_s9 = sld [smem:[#allocation25_spill]] }
  0x15   : > { %s1514_s30 = smov [#allocation8]   ;;  %s1516_s13 = smov 8  }
  0x16   : > { %s352_s14 = sshll.u32 %s1903_s1, 4  ;;  %p1136_p4 = pneg %p1620_p3  ;;  %s353_s14 = int_to_ptr.hbm [resolvable:$true] %s352_s14 }
  0x17   : > { %s388_s17 = sshll.u32 %s1514_s30, 4  ;;  %s1515_s1 = smov 128   ;;  %s389_s17 = int_to_ptr.vmem [resolvable:$true] %s388_s17 }
  0x18   : > { %p1632_p6 = pnand %p1136_p4, %p53_p1  ;;  %s1908_s3 = sld [smem:[#allocation22_spill]] }
  0x19   : > { %s386_s21 = sshll.u32 %s1905_s5, 4  ;;  %s1517_s24 = smov [#allocation11]   ;;  %s387_s21 = int_to_ptr.hbm [resolvable:$true] %s386_s21 }
  0x1a   : > { %s420_s29 = sshll.u32 %s1907_s9, 4  ;;  %s422_s30 = sshll.u32 %s1517_s24, 4  ;;  %s421_s29 = int_to_ptr.hbm [resolvable:$true] %s420_s29  ;;  %s423_s30 = int_to_ptr.vmem [resolvable:$true] %s422_s30 }
  0x1b   : > { %1139 = dma.hbm_to_vmem [thread:$0]  (!%p1632_p6), %s353_s14, 4096, %s355_s18, [#allocation6], %s1515_s1, %s1515_s1, %s1516_s13  }
  0x1c   : > { %1145 = dma.hbm_to_vmem [thread:$0]  (!%p1632_p6), %s387_s21, 4096, %s389_s17, [#allocation9], %s1515_s1, %s1515_s1, %s1516_s13  }
  0x1d   : > { %1151 = dma.hbm_to_vmem [thread:$0]  (!%p1632_p6), %s421_s29, 2048, %s423_s30, [#allocation12], %s1515_s1, %s1515_s1, %s1516_s13  }
  0x1e   : > { %s369_s23 = sshll.u32 %s1908_s3, 4  ;;  %s1518_s14 = smov [#allocation7]   ;;  %s370_s23 = int_to_ptr.hbm [resolvable:$true] %s369_s23 }
  0x1f   : > { %s371_s18 = sshll.u32 %s1518_s14, 4  ;;  %s1909_s7 = sld [smem:[#allocation24_spill]]  ;;  %s372_s18 = int_to_ptr.vmem [resolvable:$true] %s371_s18 }
  0x20   : > { %1142 = dma.hbm_to_vmem [thread:$0]  (!%p1632_p6), %s370_s23, 2048, %s372_s18, [#allocation6], %s1515_s1, %s1515_s1, %s1516_s13  }
  0x21   : > { %s1910_s11 = sld [smem:[#allocation26_spill]]  ;;  %s1519_s24 = smov [#allocation10]  }
  0x22   : > { %s405_s5 = sshll.u32 %s1519_s24, 4  ;;  %s1520_s23 = smov [#allocation13]   ;;  %s406_s5 = int_to_ptr.vmem [resolvable:$true] %s405_s5 }
  0x23   : > { %s439_s30 = sshll.u32 %s1520_s23, 4  ;;  %s1082_s14 = sadd.s32 4294967294, %s1511_s28   ;;  %s440_s30 = int_to_ptr.vmem [resolvable:$true] %s439_s30 }
  0x24   : > { %s1680_s18 = sadd.s32 1, %s1511_s28   ;;  %s39_s19 = sadd.s32 1, %s1507_s27 }
  0x25   : > { %s403_s17 = sshll.u32 %s1909_s7, 4  ;;  %s36_s21 = ssub.s32 %s1511_s28, %s1680_s18  ;;  %s404_s17 = int_to_ptr.hbm [resolvable:$true] %s403_s17 }
  0x26   : > { %1148 = dma.hbm_to_vmem [thread:$0]  (!%p1632_p6), %s404_s17, 2048, %s406_s5, [#allocation9], %s1515_s1, %s1515_s1, %s1516_s13  }
  0x27   : > { %s437_s20 = sshll.u32 %s1910_s11, 4  ;;  %p37_p7 = scmp.eq.s32.totalorder %s36_s21, 0  ;;  %s438_s20 = int_to_ptr.hbm [resolvable:$true] %s437_s20 }
  0x28   : > { %1154 = dma.hbm_to_vmem [thread:$0]  (!%p1632_p6), %s438_s20, 2048, %s440_s30, [#allocation12], %s1515_s1, %s1515_s1, %s1516_s13  }
  0x29   : > { %p46_p8 = scmp.ne.s32.totalorder %s1507_s27, %s1503_s26  ;;  %p47_p9 = scmp.eq.s32.totalorder %s1511_s28, 0 }
  0x2a   : > { %p52_p10 = scmp.ne.s32.totalorder %s1503_s26, %s1499_s25  ;;  %p328_p13 = scmp.eq.s32.totalorder %s1615_s15, 1 }
  0x2b   : > { %s1691_s17 = scalar_select %p37_p7, %s1507_s27, %s39_s19  }
  0x2c   : > { %p1693_p11 = por %p47_p9, %p46_p8  ;;  %p1699_p12 = por %p53_p1, %p52_p10 }
  0x2d   : > { %1911 = sst [smem:[#allocation20_spill]] %s1691_s17  ;;  %p334_p0 = scmp.eq.s32.totalorder %s1082_s14, 1 }
  0x2e   : > { %p1169_p2 = scmp.lt.s32.totalorder %s1511_s28, 2  ;;  %s456_s13 = sand.u32 1, %s1507_s27  }
  0x2f   : > { %p1706_p4 = por %p328_p13, %p46_p8  ;;  %p1710_p6 = por %p334_p0, %p52_p10 }
  0x30   : > { %s1091_s24 = sshll.u32 %s456_s13, 4  ;;  %s1107_s5 = sshll.u32 %s1511_s28, 4 }
  0x31   : > { %s465_s21 = scalar_lea.hbm %s1881_s0, %s1107_s5  ;;  %s460_s19 = scalar_lea.vmem [#allocation2], %s1091_s24 }
  0x32   : > { %s469_s3 = sshll.u32 %s460_s19, 4  ;;  %s467_s7 = sshll.u32 %s465_s21, 4  ;;  %s470_s3 = int_to_ptr.vmem [resolvable:$true] %s469_s3  ;;  %s468_s7 = int_to_ptr.hbm [resolvable:$true] %s467_s7 }
  0x33   : > { %p1720_p7 = pnand %p1169_p2, %p1693_p11  ;;  %s457_s9 = scalar_lea.sflag [#allocation3], %s456_s13 }
  0x34   : > { %s1403_s11 = sshra.s32 %s468_s7, 4  ;;  %s1410_s23 = scalar_lea.hbm %s1881_s0, 32  ;;  %s1404_s11 = int_to_ptr.hbm [resolvable:$true] %s1403_s11 }
  0x35   : > { %s1405_s17 = scalar_lea.hbm %s1404_s11, 16  ;;  %p1407_p9 = pneg %p1720_p7 }
  0x36   : > { %p1406_p8 = scmp.ne.s32.totalorder %s1404_s11, %s1405_s17  ;;  %p1411_p11 = scmp.lt.s32.totalorder %s1404_s11, %s1881_s0 }
  0x37   : > { %p1412_p0 = scmp.lt.s32.totalorder %s1410_s23, %s1405_s17 }
  0x38   : > { %p1408_p10 = pnand %p1407_p9, %p1406_p8 }
  0x39   : > { %p1413_p2 = por %p1412_p0, %p1411_p11 }
  0x3a   : > { %p1409_p13 = pneg %p1408_p10 }
  0x3c   : > { %p1414_p5 = pnand %p1413_p2, %p1409_p13 }
  0x3e   : > { %1417 = shalt.err (!%p1414_p5)
}
  0x3f   : > { %1158 = dma.hbm_to_vmem [thread:$0]  (!%p1720_p7), %s468_s7, 256, %s470_s3, %s457_s9  }
  0x40   : > { %478 = sbr.rel (%p1620_p3) target bundleno = 905 (0x389), region = 72  ;;  %s1737_s13 = sand.u32 (!%p1620_p3), 1, %s1503_s26  }
  0x41   : > { %s1095_s21 = sshll.u32 (!%p1620_p3), %s1737_s13, 4  ;;  %s481_s19 = scalar_lea.sflag (!%p1620_p3), [#allocation3], %s1737_s13 }
  0x42   : > { %s1741_s24 = scalar_lea.vmem (!%p1620_p3), [#allocation2], %s1095_s21 }
  0x45   : > { %1478 = dma.done.wait (%p1699_p12), %s481_s19, 256  }
  0x46   : > { %1480 = vsyncadd (%p1699_p12), %s481_s19, 4294967040 }
  0x47   : > { %1482 = dma.done.wait (%p53_p1), [#allocation6], 6144  }
  0x48   : > { %1484 = vsyncadd (%p53_p1), [#allocation6], 4294961152 }
  0x49   : > { %1486 = dma.done.wait (%p53_p1), [#allocation9], 6144  }
  0x4a   : > { %1488 = vsyncadd (%p53_p1), [#allocation9], 4294961152 }
  0x4b   : > { %1490 = dma.done.wait (%p53_p1), [#allocation12], 4096  }
  0x4c   : > { %1492 = vsyncadd (%p53_p1), [#allocation12], 4294963200  ;;  %v575_v0 = vld [vmem:[#allocation5 + $0x78] sm:$0xff]  ;;  %v574_v1 = vld [vmem:[#allocation5 + $0x70] sm:$0xff]  ;;  %s1102_s21 = sshll.u32 %s1737_s13, 3  ;;  %s1104_s19 = sshll.u32 %s1615_s15, 3 }
  0x4d   : > { %v591_v2 = vld [vmem:[#allocation5 + $0xf8] sm:$0xff]  ;;  %646 = vmatpush.msra.mxu0 %v575_v0  ;;  %v590_v3 = vld [vmem:[#allocation5 + $0xf0] sm:$0xff]  ;;  %v573_v4 = vld [vmem:[#allocation5 + $0x68] sm:$0xff]  ;;  %s1917_s7 = sld [smem:[#allocation27_spill]]  ;;  %s557_s11 = scalar_lea.vmem [#allocation14], %s1102_s21 }
  0x4e   : > { %666 = vmatpush.msra.mxu1 %v591_v2  ;;  %v589_v5 = vld [vmem:[#allocation5 + $0xe8] sm:$0xff]  ;;  %v572_v6 = vld [vmem:[#allocation5 + $0x60] sm:$0xff]  ;;  %v571_v8 = vld [vmem:[#allocation5 + $0x58] sm:$0xff]  ;;  %s952_s16 = sshll.u32 %s557_s11, 4  ;;  %s940_s1 = scalar_lea.sflag [#allocation4], %s1737_s13  ;;  %s953_s16 = int_to_ptr.vmem [resolvable:$true] %s952_s16 }
  0x4f   : > { %647 = vmatpush.msra.mxu0 %v574_v1  ;;  %v588_v7 = vld [vmem:[#allocation5 + $0xe0] sm:$0xff]  ;;  %v587_v9 = vld [vmem:[#allocation5 + $0xd8] sm:$0xff]  ;;  %v570_v10 = vld [vmem:[#allocation5 + $0x50] sm:$0xff] }
  0x50   : > { %667 = vmatpush.msra.mxu1 %v590_v3  ;;  %v586_v11 = vld [vmem:[#allocation5 + $0xd0] sm:$0xff]  ;;  %v569_v12 = vld [vmem:[#allocation5 + $0x48] sm:$0xff]  ;;  %v568_v14 = vld [vmem:[#allocation5 + $0x40] sm:$0xff] }
  0x51   : > { %648 = vmatpush.msra.mxu0 %v573_v4  ;;  %v585_v13 = vld [vmem:[#allocation5 + $0xc8] sm:$0xff]  ;;  %v625_v15 = vld [vmem:[#allocation8 + $0x78] sm:$0xff]  ;;  %v584_v17 = vld [vmem:[#allocation5 + $0xc0] sm:$0xff] }
  0x52   : > { %668 = vmatpush.msra.mxu1 %v589_v5  ;;  %v608_v16 = vld [vmem:[#allocation7 + $0x78] sm:$0xff]  ;;  %713 = vmatpush.msra.mxu3 %v625_v15  ;;  %v624_v18 = vld [vmem:[#allocation8 + $0x70] sm:$0xff]  ;;  %v623_v20 = vld [vmem:[#allocation8 + $0x68] sm:$0xff] }
  0x53   : > { %649 = vmatpush.msra.mxu0 %v572_v6  ;;  %690 = vmatpush.msra.mxu2 %v608_v16  ;;  %v607_v19 = vld [vmem:[#allocation7 + $0x70] sm:$0xff]  ;;  %v606_v21 = vld [vmem:[#allocation7 + $0x68] sm:$0xff]  ;;  %v567_v22 = vld [vmem:[#allocation5 + $0x38] sm:$0xff]  ;;  %s950_s9 = scalar_lea.hbm %s1917_s7, %s1104_s19  ;;  %s1453_s30 = scalar_lea.hbm %s1917_s7, 16 }
  0x54   : > { %669 = vmatpush.msra.mxu1 %v588_v7  ;;  %v583_v23 = vld [vmem:[#allocation5 + $0xb8] sm:$0xff]  ;;  %714 = vmatpush.msra.mxu3 %v624_v18  ;;  %v622_v24 = vld [vmem:[#allocation8 + $0x60] sm:$0xff]  ;;  %v566_v26 = vld [vmem:[#allocation5 + $0x30] sm:$0xff]  ;;  %s954_s17 = sshll.u32 %s950_s9, 4  ;;  %s955_s17 = int_to_ptr.hbm [resolvable:$true] %s954_s17 }
  0x55   : > { %650 = vmatpush.msra.mxu0 %v571_v8  ;;  %691 = vmatpush.msra.mxu2 %v607_v19  ;;  %v605_v25 = vld [vmem:[#allocation7 + $0x60] sm:$0xff]  ;;  %v582_v27 = vld [vmem:[#allocation5 + $0xb0] sm:$0xff]  ;;  %v621_v28 = vld [vmem:[#allocation8 + $0x58] sm:$0xff]  ;;  %s1447_s14 = sshra.s32 %s955_s17, 4  ;;  %s1448_s14 = int_to_ptr.hbm [resolvable:$true] %s1447_s14 }
  0x56   : > { %670 = vmatpush.msra.mxu1 %v587_v9  ;;  %715 = vmatpush.msra.mxu3 %v623_v20  ;;  %v604_v29 = vld [vmem:[#allocation7 + $0x58] sm:$0xff]  ;;  %v565_v30 = vld [vmem:[#allocation5 + $0x28] sm:$0xff]  ;;  %v620_v32 = vld [vmem:[#allocation8 + $0x50] sm:$0xff]  ;;  %s1449_s15 = scalar_lea.hbm %s1448_s14, 8  ;;  %p1454_p12 = scmp.lt.s32.totalorder %s1448_s14, %s1917_s7 }
  0x57   : > { %651 = vmatpush.msra.mxu0 %v570_v10  ;;  %692 = vmatpush.msra.mxu2 %v606_v21  ;;  %v581_v31 = vld [vmem:[#allocation5 + $0xa8] sm:$0xff]  ;;  %v603_v33 = vld [vmem:[#allocation7 + $0x50] sm:$0xff]  ;;  %v564_v34 = vld [vmem:[#allocation5 + $0x20] sm:$0xff]  ;;  %p1450_p1 = scmp.ne.s32.totalorder %s1448_s14, %s1449_s15  ;;  %p1455_p7 = scmp.lt.s32.totalorder %s1453_s30, %s1449_s15 }
  0x58   : > { %671 = vmatpush.msra.mxu1 %v586_v11  ;;  %716 = vmatpush.msra.mxu3 %v622_v24  ;;  %v563_v35 = vld [vmem:[#allocation5 + $0x18] sm:$0xff]  ;;  %v580_v36 = vld [vmem:[#allocation5 + $0xa0] sm:$0xff]  ;;  %v619_v38 = vld [vmem:[#allocation8 + $0x48] sm:$0xff] }
  0x59   : > { %652 = vmatpush.msra.mxu0 %v569_v12  ;;  %693 = vmatpush.msra.mxu2 %v605_v25  ;;  %v579_v37 = vld [vmem:[#allocation5 + $0x98] sm:$0xff]  ;;  %v602_v39 = vld [vmem:[#allocation7 + $0x48] sm:$0xff]  ;;  %v562_v40 = vld [vmem:[#allocation5 + $0x10] sm:$0xff]  ;;  %p1451_p3 = pnand %p1450_p1, %p1706_p4  ;;  %p1456_p8 = por %p1455_p7, %p1454_p12 }
  0x5a   : > { %672 = vmatpush.msra.mxu1 %v585_v13  ;;  %717 = vmatpush.msra.mxu3 %v621_v28  ;;  %v578_v41 = vld [vmem:[#allocation5 + $0x90] sm:$0xff]  ;;  %v618_v42 = vld [vmem:[#allocation8 + $0x40] sm:$0xff]  ;;  %v617_v44 = vld [vmem:[#allocation8 + $0x38] sm:$0xff] }
  0x5b   : > { %653 = vmatpush.msra.mxu0 %v568_v14  ;;  %694 = vmatpush.msra.mxu2 %v604_v29  ;;  %v601_v43 = vld [vmem:[#allocation7 + $0x40] sm:$0xff]  ;;  %v600_v45 = vld [vmem:[#allocation7 + $0x38] sm:$0xff]  ;;  %v561_v46 = vld [vmem:[#allocation5 + $0x8] sm:$0xff]  ;;  %p1452_p5 = pneg %p1451_p3 }
  0x5c   : > { %673 = vmatpush.msra.mxu1 %v584_v17  ;;  %718 = vmatpush.msra.mxu3 %v620_v32  ;;  %v577_v47 = vld [vmem:[#allocation5 + $0x88] sm:$0xff]  ;;  %v616_v48 = vld [vmem:[#allocation8 + $0x30] sm:$0xff]  ;;  %v560_v50 = vld [vmem:[#allocation5] sm:$0xff] }
  0x5d   : > { %654 = vmatpush.msra.mxu0 %v567_v22  ;;  %695 = vmatpush.msra.mxu2 %v603_v33  ;;  %v599_v49 = vld [vmem:[#allocation7 + $0x30] sm:$0xff]  ;;  %v576_v51 = vld [vmem:[#allocation5 + $0x80] sm:$0xff]  ;;  %v1761_v53 = vld [vmem:[%s1741_s24 + $0x8] sm:$0xff]  ;;  %p1457_p9 = pnand %p1456_p8, %p1452_p5 }
  0x5e   : > { %674 = vmatpush.msra.mxu1 %v583_v23  ;;  %719 = vmatpush.msra.mxu3 %v619_v38  ;;  %v558_v52 = vld [vmem:[%s1741_s24] sm:$0xff]  ;;  %v641_v54 = vld [vmem:[#allocation8 + $0xf8] sm:$0xff]  ;;  %v615_v55 = vld [vmem:[#allocation8 + $0x28] sm:$0xff] }
  0x5f   : > { %655 = vmatpush.msra.mxu0 %v566_v26  ;;  %696 = vmatpush.msra.mxu2 %v602_v39  ;;  %v598_v56 = vld [vmem:[#allocation7 + $0x28] sm:$0xff]  ;;  %v640_v57 = vld [vmem:[#allocation8 + $0xf0] sm:$0xff]  ;;  %v614_v58 = vld [vmem:[#allocation8 + $0x20] sm:$0xff] }
  0x60   : > { %675 = vmatpush.msra.mxu1 %v582_v27  ;;  %720 = vmatpush.msra.mxu3 %v618_v42  ;;  %v597_v59 = vld [vmem:[#allocation7 + $0x20] sm:$0xff]  ;;  %v639_v60 = vld [vmem:[#allocation8 + $0xe8] sm:$0xff]  ;;  %v613_v61 = vld [vmem:[#allocation8 + $0x18] sm:$0xff] }
  0x61   : > { %656 = vmatpush.msra.mxu0 %v565_v30  ;;  %697 = vmatpush.msra.mxu2 %v601_v43  ;;  %v638_v62 = vld [vmem:[#allocation8 + $0xe0] sm:$0xff]  ;;  %v637_v63 = vld [vmem:[#allocation8 + $0xd8] sm:$0xff]  ;;  %v636_v0 = vld [vmem:[#allocation8 + $0xd0] sm:$0xff] }
  0x62   : > { %676 = vmatpush.msra.mxu1 %v581_v31  ;;  %721 = vmatpush.msra.mxu3 %v617_v44  ;;  %v635_v1 = vld [vmem:[#allocation8 + $0xc8] sm:$0xff]  ;;  %v634_v2 = vld [vmem:[#allocation8 + $0xc0] sm:$0xff]  ;;  %v633_v3 = vld [vmem:[#allocation8 + $0xb8] sm:$0xff] }
  0x63   : > { %657 = vmatpush.msra.mxu0 %v564_v34  ;;  %698 = vmatpush.msra.mxu2 %v600_v45  ;;  %v596_v4 = vld [vmem:[#allocation7 + $0x18] sm:$0xff]  ;;  %v612_v5 = vld [vmem:[#allocation8 + $0x10] sm:$0xff]  ;;  %v611_v8 = vld [vmem:[#allocation8 + $0x8] sm:$0xff] }
  0x64   : > { %677 = vmatpush.msra.mxu1 %v580_v36  ;;  %722 = vmatpush.msra.mxu3 %v616_v48  ;;  %v632_v6 = vld [vmem:[#allocation8 + $0xb0] sm:$0xff]  ;;  %v631_v9 = vld [vmem:[#allocation8 + $0xa8] sm:$0xff]  ;;  %v610_v11 = vld [vmem:[#allocation8] sm:$0xff] }
  0x65   : > { %658 = vmatpush.msra.mxu0 %v563_v35  ;;  %699 = vmatpush.msra.mxu2 %v599_v49  ;;  %v595_v7 = vld [vmem:[#allocation7 + $0x10] sm:$0xff]  ;;  %v594_v10 = vld [vmem:[#allocation7 + $0x8] sm:$0xff]  ;;  %v630_v12 = vld [vmem:[#allocation8 + $0xa0] sm:$0xff] }
  0x66   : > { %678 = vmatpush.msra.mxu1 %v579_v37  ;;  %723 = vmatpush.msra.mxu3 %v615_v55  ;;  %v593_v13 = vld [vmem:[#allocation7] sm:$0xff]  ;;  %v629_v14 = vld [vmem:[#allocation8 + $0x98] sm:$0xff]  ;;  %v628_v15 = vld [vmem:[#allocation8 + $0x90] sm:$0xff] }
  0x67   : > { %659 = vmatpush.msra.mxu0 %v562_v40  ;;  %700 = vmatpush.msra.mxu2 %v598_v56  ;;  %v627_v16 = vld [vmem:[#allocation8 + $0x88] sm:$0xff]  ;;  %v769_v17 = vld [vmem:[#allocation10 + $0x78] sm:$0xff]  ;;  %v768_v19 = vld [vmem:[#allocation10 + $0x70] sm:$0xff] }
  0x68   : > { %679 = vmatpush.msra.mxu1 %v578_v41  ;;  %724 = vmatpush.msra.mxu3 %v614_v58  ;;  %v1764_v18 = vld [vmem:[#allocation13 + $0x78] sm:$0xff]  ;;  %v1766_v20 = vld [vmem:[#allocation13 + $0x70] sm:$0xff]  ;;  %v626_v21 = vld [vmem:[#allocation8 + $0x80] sm:$0xff] }
  0x69   : > { %660 = vmatpush.msra.mxu0 %v561_v46  ;;  %701 = vmatpush.msra.mxu2 %v597_v59  ;;  %v767_v22 = vld [vmem:[#allocation10 + $0x68] sm:$0xff]  ;;  %v766_v24 = vld [vmem:[#allocation10 + $0x60] sm:$0xff]  ;;  %v765_v26 = vld [vmem:[#allocation10 + $0x58] sm:$0xff] }
  0x6a   : > { %680 = vmatpush.msra.mxu1 %v577_v47  ;;  %725 = vmatpush.msra.mxu3 %v613_v61  ;;  %v1769_v23 = vld [vmem:[#allocation13 + $0x68] sm:$0xff]  ;;  %v1772_v25 = vld [vmem:[#allocation13 + $0x60] sm:$0xff]  ;;  %v1776_v27 = vld [vmem:[#allocation13 + $0x58] sm:$0xff] }
  0x6b   : > { %661 = vmatpush.msra.mxu0 %v560_v50  ;;  %702 = vmatpush.msra.mxu2 %v596_v4  ;;  %v764_v28 = vld [vmem:[#allocation10 + $0x50] sm:$0xff]  ;;  %v763_v30 = vld [vmem:[#allocation10 + $0x48] sm:$0xff]  ;;  %v762_v32 = vld [vmem:[#allocation10 + $0x40] sm:$0xff] }
  0x6c   : > { %681 = vmatpush.msra.mxu1 %v576_v51  ;;  %662 = vmatmul.f32.vlgmr.msra.gmra.mxu0 %v558_v52  ;;  %v1779_v29 = vld [vmem:[#allocation13 + $0x50] sm:$0xff]  ;;  %v1782_v31 = vld [vmem:[#allocation13 + $0x48] sm:$0xff]  ;;  %v1785_v33 = vld [vmem:[#allocation13 + $0x40] sm:$0xff] }
  0x6d   : > { %682 = vmatmul.f32.vlgmr.msra.gmra.mxu1 %v1761_v53  ;;  %733 = vmatpush.msrb.mxu0 %v641_v54  ;;  %v761_v34 = vld [vmem:[#allocation10 + $0x38] sm:$0xff]  ;;  %v760_v36 = vld [vmem:[#allocation10 + $0x30] sm:$0xff]  ;;  %v759_v38 = vld [vmem:[#allocation10 + $0x28] sm:$0xff] }
  0x6e   : > { %726 = vmatpush.msra.mxu3 %v612_v5  ;;  %703 = vmatpush.msra.mxu2 %v595_v7  ;;  %v1788_v35 = vld [vmem:[#allocation13 + $0x38] sm:$0xff]  ;;  %v1791_v37 = vld [vmem:[#allocation13 + $0x30] sm:$0xff]  ;;  %v1794_v39 = vld [vmem:[#allocation13 + $0x28] sm:$0xff] }
  0x6f   : > { %734 = vmatpush.msrb.mxu0 %v640_v57  ;;  %808 = vmatpush.msrb.mxu1 %v769_v17  ;;  %v758_v40 = vld [vmem:[#allocation10 + $0x20] sm:$0xff]  ;;  %v757_v48 = vld [vmem:[#allocation10 + $0x18] sm:$0xff]  ;;  %v756_v50 = vld [vmem:[#allocation10 + $0x10] sm:$0xff] }
  0x70   : > { %727 = vmatpush.msra.mxu3 %v611_v8  ;;  %704 = vmatpush.msra.mxu2 %v594_v10  ;;  %v1217_v41 = vld [vmem:[%s1883_s2] ss:$0 sm:$0xff]  ;;  %v1804_v49 = vld [vmem:[#allocation13 + $0x18] sm:$0xff]  ;;  %v1807_v51 = vld [vmem:[#allocation13 + $0x10] sm:$0xff] }
  0x71   : > { %735 = vmatpush.msrb.mxu0 %v639_v60  ;;  %809 = vmatpush.msrb.mxu1 %v768_v19  ;;  %v1800_v42 = vld [vmem:[#allocation13 + $0x20] sm:$0xff]  ;;  %v786_v56 = vld [vmem:[#allocation11 + $0x78] sm:$0xff]  ;;  %v785_v57 = vld [vmem:[#allocation11 + $0x70] sm:$0xff] }
  0x72   : > { %728 = vmatpush.msra.mxu3 %v610_v11  ;;  %705 = vmatpush.msra.mxu2 %v593_v13  ;;  %v754_v54 = vld [vmem:[#allocation10] sm:$0xff]  ;;  %v784_v58 = vld [vmem:[#allocation11 + $0x68] sm:$0xff]  ;;  %v782_v60 = vld [vmem:[#allocation11 + $0x58] sm:$0xff] }
  0x73   : > { %736 = vmatpush.msrb.mxu0 %v638_v62  ;;  %729 = vmatmul.f32.vlgmr.msra.gmra.mxu3 %v558_v52  ;;  %v755_v52 = vld [vmem:[#allocation10 + $0x8] sm:$0xff]  ;;  %v1813_v55 = vld [vmem:[#allocation13] sm:$0xff]  ;;  %v781_v61 = vld [vmem:[#allocation11 + $0x50] sm:$0xff] }
  0x74   : > { %855 = vmatpush.msrb.mxu3 %v1764_v18  ;;  %810 = vmatpush.msrb.mxu1 %v767_v22  ;;  %v783_v59 = vld [vmem:[#allocation11 + $0x60] sm:$0xff]  ;;  %v780_v62 = vld [vmem:[#allocation11 + $0x48] sm:$0xff]  ;;  %v774_v7 = vld [vmem:[#allocation11 + $0x18] sm:$0xff] }
  0x75   : > { %737 = vmatpush.msrb.mxu0 %v637_v63  ;;  %832 = vmatpush.msrb.mxu2 %v786_v56  ;;  %v779_v63 = vld [vmem:[#allocation11 + $0x40] sm:$0xff] }
  0x76   : > { %856 = vmatpush.msrb.mxu3 %v1766_v20  ;;  %811 = vmatpush.msrb.mxu1 %v766_v24  ;;  %v775_v5 = vld [vmem:[#allocation11 + $0x20] sm:$0xff] }
  0x77   : > { %738 = vmatpush.msrb.mxu0 %v636_v0  ;;  %833 = vmatpush.msrb.mxu2 %v785_v57  ;;  %v778_v0 = vld [vmem:[#allocation11 + $0x38] sm:$0xff] }
  0x78   : > { %857 = vmatpush.msrb.mxu3 %v1769_v23  ;;  %812 = vmatpush.msrb.mxu1 %v765_v26 }
  0x79   : > { %739 = vmatpush.msrb.mxu0 %v635_v1  ;;  %834 = vmatpush.msrb.mxu2 %v784_v58  ;;  %v777_v1 = vld [vmem:[#allocation11 + $0x30] sm:$0xff] }
  0x7a   : > { %858 = vmatpush.msrb.mxu3 %v1772_v25  ;;  %813 = vmatpush.msrb.mxu1 %v764_v28 }
  0x7b   : > { %740 = vmatpush.msrb.mxu0 %v634_v2  ;;  %835 = vmatpush.msrb.mxu2 %v783_v59  ;;  %v1218_v2 = vld [vmem:[%s1887_s6] ss:$0 sm:$0xff] }
  0x7c   : > { %859 = vmatpush.msrb.mxu3 %v1776_v27  ;;  %814 = vmatpush.msrb.mxu1 %v763_v30 }
  0x7d   : > { %741 = vmatpush.msrb.mxu0 %v633_v3  ;;  %836 = vmatpush.msrb.mxu2 %v782_v60  ;;  %v776_v3 = vld [vmem:[#allocation11 + $0x28] sm:$0xff] }
  0x7e   : > { %860 = vmatpush.msrb.mxu3 %v1779_v29  ;;  %815 = vmatpush.msrb.mxu1 %v762_v32 }
  0x7f   : > { %742 = vmatpush.msrb.mxu0 %v632_v6  ;;  %837 = vmatpush.msrb.mxu2 %v781_v61 }
  0x80   : > { %861 = vmatpush.msrb.mxu3 %v1782_v31  ;;  %816 = vmatpush.msrb.mxu1 %v761_v34 }
  0x81   : > { %743 = vmatpush.msrb.mxu0 %v631_v9  ;;  %838 = vmatpush.msrb.mxu2 %v780_v62  ;;  %v1219_v9 = vld [vmem:[%s1885_s4] ss:$0 sm:$0xff] }
  0x82   : > { %862 = vmatpush.msrb.mxu3 %v1785_v33  ;;  %817 = vmatpush.msrb.mxu1 %v760_v36 }
  0x83   : > { %744 = vmatpush.msrb.mxu0 %v630_v12  ;;  %839 = vmatpush.msrb.mxu2 %v779_v63 }
  0x84   : > { %863 = vmatpush.msrb.mxu3 %v1788_v35  ;;  %818 = vmatpush.msrb.mxu1 %v759_v38 }
  0x85   : > { %745 = vmatpush.msrb.mxu0 %v629_v14  ;;  %840 = vmatpush.msrb.mxu2 %v778_v0  ;;  %v773_v14 = vld [vmem:[#allocation11 + $0x10] sm:$0xff] }
  0x86   : > { %864 = vmatpush.msrb.mxu3 %v1791_v37  ;;  %819 = vmatpush.msrb.mxu1 %v758_v40 }
  0x87   : > { %746 = vmatpush.msrb.mxu0 %v628_v15  ;;  %841 = vmatpush.msrb.mxu2 %v777_v1  ;;  %v772_v15 = vld [vmem:[#allocation11 + $0x8] sm:$0xff] }
  0x88   : > { %865 = vmatpush.msrb.mxu3 %v1794_v39  ;;  %820 = vmatpush.msrb.mxu1 %v757_v48 }
  0x89   : > { %747 = vmatpush.msrb.mxu0 %v627_v16  ;;  %842 = vmatpush.msrb.mxu2 %v776_v3  ;;  %v771_v16 = vld [vmem:[#allocation11] sm:$0xff] }
  0x8a   : > { %866 = vmatpush.msrb.mxu3 %v1800_v42  ;;  %821 = vmatpush.msrb.mxu1 %v756_v50 }
  0x8b   : > { %748 = vmatpush.msrb.mxu0 %v626_v21  ;;  %843 = vmatpush.msrb.mxu2 %v775_v5  ;;  %v1221_v21 = vld [vmem:[%s1893_s12] ss:$0 sm:$0xff] }
  0x8c   : > { %749 = vmatmul.f32.vlgmr.msrb.gmra.mxu0 %v1761_v53  ;;  %867 = vmatpush.msrb.mxu3 %v1804_v49  ;;  %v1810_v53 = vld [vmem:[#allocation13 + $0x8] sm:$0xff] }
  0x8d   : > { %876 = vmatpush.msra.mxu0 %v769_v17  ;;  %822 = vmatpush.msrb.mxu1 %v755_v52  ;;  %v1220_v17 = vld [vmem:[%s1889_s8] ss:$0 sm:$0xff] }
  0x8e   : > { %868 = vmatpush.msrb.mxu3 %v1807_v51  ;;  %844 = vmatpush.msrb.mxu2 %v774_v7 }
  0x8f   : > { %877 = vmatpush.msra.mxu0 %v768_v19  ;;  %823 = vmatpush.msrb.mxu1 %v754_v54 }
  0x90   : > { %869 = vmatpush.msrb.mxu3 %v1810_v53  ;;  %845 = vmatpush.msrb.mxu2 %v773_v14 }
  0x91   : > { %878 = vmatpush.msra.mxu0 %v767_v22  ;;  %897 = vmatpush.msra.mxu1 %v786_v56  ;;  %v1222_v22 = vld [vmem:[%s1891_s10] ss:$0 sm:$0xff] }
  0x92   : > { %870 = vmatpush.msrb.mxu3 %v1813_v55  ;;  %846 = vmatpush.msrb.mxu2 %v772_v15 }
  0x93   : > { %879 = vmatpush.msra.mxu0 %v766_v24  ;;  %898 = vmatpush.msra.mxu1 %v785_v57 }
  0x94   : > { %847 = vmatpush.msrb.mxu2 %v771_v16 }
  0x95   : > { %880 = vmatpush.msra.mxu0 %v765_v26  ;;  %899 = vmatpush.msra.mxu1 %v784_v58 }
  0x97   : > { %881 = vmatpush.msra.mxu0 %v764_v28  ;;  %900 = vmatpush.msra.mxu1 %v783_v59 }
  0x99   : > { %882 = vmatpush.msra.mxu0 %v763_v30  ;;  %901 = vmatpush.msra.mxu1 %v782_v60 }
  0x9b   : > { %883 = vmatpush.msra.mxu0 %v762_v32  ;;  %902 = vmatpush.msra.mxu1 %v781_v61 }
  0x9d   : > { %884 = vmatpush.msra.mxu0 %v761_v34  ;;  %903 = vmatpush.msra.mxu1 %v780_v62 }
  0x9f   : > { %885 = vmatpush.msra.mxu0 %v760_v36  ;;  %904 = vmatpush.msra.mxu1 %v779_v63 }
  0xa1   : > { %886 = vmatpush.msra.mxu0 %v759_v38  ;;  %905 = vmatpush.msra.mxu1 %v778_v0 }
  0xa3   : > { %887 = vmatpush.msra.mxu0 %v758_v40  ;;  %906 = vmatpush.msra.mxu1 %v777_v1 }
  0xa5   : > { %888 = vmatpush.msra.mxu0 %v757_v48  ;;  %907 = vmatpush.msra.mxu1 %v776_v3 }
  0xa7   : > { %889 = vmatpush.msra.mxu0 %v756_v50  ;;  %908 = vmatpush.msra.mxu1 %v775_v5 }
  0xa9   : > { %890 = vmatpush.msra.mxu0 %v755_v52  ;;  %909 = vmatpush.msra.mxu1 %v774_v7 }
  0xab   : > { %891 = vmatpush.msra.mxu0 %v754_v54  ;;  %910 = vmatpush.msra.mxu1 %v773_v14 }
  0xad   : > { %911 = vmatpush.msra.mxu1 %v772_v15 }
  0xaf   : > { %912 = vmatpush.msra.mxu1 %v771_v16 }
  0xe9   : > { %v663_v43 = vpop.f32.mrf.mxu0 }
  0xea   : > { %v683_v44 = vpop.f32.mrf.mxu1  ;;  %v664_v45 = vadd.f32 %v1217_v41, %v663_v43 }
  0xec   : > { %v684_v46 = vadd.f32 %v683_v44, %v664_v45 }
  0xee   : > { %v686_v47 = vmax.f32 %v684_v46, 0.0 }
  0xf0   : > { %706 = vmatmul.f32.vlgmr.msra.gmra.mxu2 %v686_v47 }
  0xf1   : > { %917 = vmatpush.msra.mxu2 %v1764_v18 }
  0xf3   : > { %918 = vmatpush.msra.mxu2 %v1766_v20 }
  0xf5   : > { %919 = vmatpush.msra.mxu2 %v1769_v23 }
  0xf6   : > { %v730_v4 = vpop.f32.mrf.mxu3 }
  0xf7   : > { %v731_v6 = vadd.f32 %v1218_v2, %v730_v4  ;;  %920 = vmatpush.msra.mxu2 %v1772_v25 }
  0xf9   : > { %921 = vmatpush.msra.mxu2 %v1776_v27 }
  0xfb   : > { %922 = vmatpush.msra.mxu2 %v1779_v29 }
  0xfd   : > { %923 = vmatpush.msra.mxu2 %v1782_v31 }
  0xff   : > { %924 = vmatpush.msra.mxu2 %v1785_v33 }
 0x101   : > { %925 = vmatpush.msra.mxu2 %v1788_v35 }
 0x103   : > { %926 = vmatpush.msra.mxu2 %v1791_v37 }
 0x105   : > { %927 = vmatpush.msra.mxu2 %v1794_v39 }
 0x107   : > { %928 = vmatpush.msra.mxu2 %v1800_v42 }
 0x109   : > { %v750_v8 = vpop.f32.mrf.mxu0  ;;  %929 = vmatpush.msra.mxu2 %v1804_v49 }
 0x10a   : > { %v751_v10 = vadd.f32 %v750_v8, %v731_v6 }
 0x10b   : > { %930 = vmatpush.msra.mxu2 %v1807_v51 }
 0x10d   : > { %931 = vmatpush.msra.mxu2 %v1810_v53 }
 0x10f   : > { %932 = vmatpush.msra.mxu2 %v1813_v55 }
 0x173   : > { %v707_v11 = vpop.f32.mrf.mxu2 }
 0x174   : > { %v708_v12 = vadd.f32 %v1219_v9, %v707_v11 }
 0x176   : > { %v753_v13 = vadd.f32 %v751_v10, %v708_v12 }
 0x178   : > { %824 = vmatmul.f32.vlgmr.msrb.gmra.mxu1 %v753_v13  ;;  %871 = vmatmul.f32.vlgmr.msrb.gmra.mxu3 %v753_v13 }
 0x1f5   : > { %v825_v18 = vpop.f32.mrf.mxu1 }
 0x1f6   : > { %v826_v19 = vadd.f32 %v1220_v17, %v825_v18 }
 0x1f8   : > { %v828_v20 = vmax.f32 %v826_v19, 0.0 }
 0x1fa   : > { %848 = vmatmul.f32.vlgmr.msrb.gmra.mxu2 %v828_v20 }
 0x1fb   : > { %v872_v23 = vpop.f32.mrf.mxu3 }
 0x1fc   : > { %v873_v25 = vadd.f32 %v1221_v21, %v872_v23 }
 0x27d   : > { %v849_v24 = vpop.f32.mrf.mxu2 }
 0x27e   : > { %v850_v26 = vadd.f32 %v1222_v22, %v849_v24 }
 0x280   : > { %v875_v27 = vadd.f32 %v873_v25, %v850_v26 }
 0x282   : > { %892 = vmatmul.f32.vlgmr.msra.gmra.mxu0 %v875_v27  ;;  %933 = vmatmul.f32.vlgmr.msra.gmra.mxu2 %v875_v27 }
 0x2ff   : > { %v893_v28 = vpop.f32.mrf.mxu0 }
 0x300   : > { %v894_v29 = vadd.f32 %v1220_v17, %v893_v28 }
 0x302   : > { %v896_v30 = vmax.f32 %v894_v29, 0.0 }
 0x304   : > { %913 = vmatmul.f32.vlgmr.msra.gmra.mxu1 %v896_v30 }
 0x305   : > { %v934_v31 = vpop.f32.mrf.mxu2 }
 0x306   : > { %v935_v33 = vadd.f32 %v1221_v21, %v934_v31 }
 0x381   : > { %v914_v32 = vpop.f32.mrf.mxu1 }
 0x382   : > { %v915_v34 = vadd.f32 %v1222_v22, %v914_v32 }
 0x384   : > { %v937_v35 = vadd.f32 %v935_v33, %v915_v34 }
 0x386   : > { %938 = vst [vmem:[%s557_s11] sm:$0xff] %v937_v35 }
 0x387   : > { %1460 = shalt.err (!%p1457_p9)
}
 0x388   : > { %1134 = dma.vmem_to_hbm [thread:$0]  (%p1706_p4), %s953_s16, 128, %s955_s17, %s940_s1  }
 0x389 PF: > { %s966_s13 = sand.u32 1, %s1499_s25   ;;  %p1918_p10 = scmp.ge.s32.totalorder %s1511_s28, 2 }
 0x38a   : > { %s967_s19 = scalar_lea.sflag [#allocation4], %s966_s13 }
 0x38b   : > { %p1160_p13 = pnand %p1918_p10, %p1710_p6 }
 0x38d   : > { %p1161_p11 = pneg %p1160_p13 }
 0x38f   : > { %1494 = dma.done.wait (%p1161_p11), %s967_s19, 128  }
 0x390   : > { %1496 = vsyncadd (%p1161_p11), %s967_s19, 4294967168  ;;  %s1919_s24 = sld [smem:[#allocation20_spill]]  ;;  %p29_p0 = scmp.ge.s32.totalorder %s1680_s18, 4  }
 0x391   : > { %s1920_s25 = smov %s1503_s26  ;;  %s1921_s26 = smov %s1507_s27 }
 0x392   : > { %s1923_s28 = smov %s1680_s18  ;;  %31 = sbr.rel (!%p29_p0) target bundleno = 16 (0x10), region = 141 }
 0x396   : > { %s1922_s27 = smov %s1919_s24 }
 0x397   :  { %973 = vsyncpa [#allocation3], 1 }
 0x398   :  { %975 = vsyncpa [#allocation3 + $0x1], 1 }
 0x399   :  { %976 = vsyncpa [#allocation6], 1 }
 0x39a   :  { %977 = vsyncpa [#allocation9], 1 }
 0x39b   :  { %978 = vsyncpa [#allocation12], 1 }
 0x39c   :  { %979 = vsyncpa [#allocation4], 1 }
 0x39d   :  { %981 = vsyncpa [#allocation4 + $0x1], 1 }

</bundles_post_ra>
